<compile_context>
chip_gen: v7x
topology: tpu7x:2x2x1
jax: 0.10.0
libtpu: 0.0.40
codegen_flags: <defaults>
</compile_context>

<pallas_src>
import functools
import math

import jax
import jax.numpy as jnp
from jax.experimental import pallas as pl
from jax.experimental.pallas import tpu as pltpu


DEFAULT_BALANCING_WEIGHTS = (1.0, 2.0, 5.0, 10.0, 30.0)

_LANES = 128
_ROW_ALIGN = 32          # row multiple that satisfies f32 (8), bf16 (16), int8 (32) tiles


def _target_block_bytes():
    """Bytes per (widest-dtype) pipeline buffer, derived from VMEM capacity."""
    try:
        vmem_cap = pltpu.get_tpu_info().vmem_capacity_bytes
    except Exception:
        vmem_cap = 64 * 1024 * 1024   # conservative (v7x per-TC) fallback
    # ~vmem/32 per buffer keeps the 4-stream x 2-buffer footprint well under
    # the scoped-VMEM default on every generation:
    #   v5e/v6e (128 MiB) -> 4 MiB blocks (~<=32 MiB footprint)
    #   v7x     ( 64 MiB) -> 2 MiB blocks (~<=16 MiB footprint)
    return int(min(4 * 1024 * 1024, max(1 * 1024 * 1024, vmem_cap // 32)))


def _pick_block_rows(rows, max_itemsize):
    target_rows = _target_block_bytes() // (_LANES * max_itemsize)
    target_rows = max(_ROW_ALIGN, (target_rows // _ROW_ALIGN) * _ROW_ALIGN)
    if rows > target_rows:
        return target_rows
    # Small inputs: split into >=2 blocks when possible so both v7x TensorCores
    # (grid sharded via "parallel" dimension semantics) get work.
    if rows >= 2 * _ROW_ALIGN:
        half = ((rows + 1) // 2 + _ROW_ALIGN - 1) // _ROW_ALIGN * _ROW_ALIGN
        if half < rows:
            return half
    return rows


def _weighted_mae_kernel(pred_ref, targ_ref, mask_ref, out_ref, *, balancing_weights):
    """Elementwise hot path: weights(target, mask) * |pred - target|.

    Loads in native dtype (mask may be int8/uint8/bf16/f32); computes in f32
    in-register; stores back in the output dtype.
    """
    p = pred_ref[...].astype(jnp.float32)
    t = targ_ref[...].astype(jnp.float32)
    m = mask_ref[...].astype(jnp.float32)

    # weights = BW[0]; then += (BW[i]-BW[i-1]) * (target >= BW[i]) for i >= 1
    w = jnp.full(t.shape, balancing_weights[0], dtype=jnp.float32)
    for i in range(1, len(balancing_weights)):
        delta = jnp.float32(balancing_weights[i] - balancing_weights[i - 1])
        w = w + jnp.where(t >= balancing_weights[i], delta, jnp.float32(0.0))
    w = w * m

    out_ref[...] = (w * jnp.abs(p - t)).astype(out_ref.dtype)


def _run_elementwise(pred2d, targ2d, mask2d, balancing_weights, out_dtype):
    rows, lanes = pred2d.shape
    assert lanes == _LANES

    out_itemsize = jnp.dtype(out_dtype).itemsize
    max_itemsize = max(pred2d.dtype.itemsize, targ2d.dtype.itemsize,
                       mask2d.dtype.itemsize, out_itemsize)
    block_rows = _pick_block_rows(rows, max_itemsize)
    grid = (pl.cdiv(rows, block_rows),)
    spec = pl.BlockSpec((block_rows, _LANES), lambda i: (i, 0))

    # Double-buffered footprint for all 4 streams + headroom for Mosaic scratch.
    bytes_per_step = block_rows * _LANES * (
        pred2d.dtype.itemsize + targ2d.dtype.itemsize
        + mask2d.dtype.itemsize + out_itemsize)
    vmem_limit = int(max(32 << 20, 2 * bytes_per_step + (8 << 20)))

    kernel = functools.partial(
        _weighted_mae_kernel,
        balancing_weights=tuple(float(w) for w in balancing_weights),
    )
    return pl.pallas_call(
        kernel,
        out_shape=jax.ShapeDtypeStruct((rows, _LANES), out_dtype),
        grid_spec=pltpu.PrefetchScalarGridSpec(
            num_scalar_prefetch=0,
            grid=grid,
            in_specs=[spec, spec, spec],
            out_specs=spec,
        ),
        compiler_params=pltpu.CompilerParams(
            dimension_semantics=("parallel",),   # shards the grid across v7x's 2 TCs
            vmem_limit_bytes=vmem_limit,
        ),
    )(pred2d, targ2d, mask2d)


def weighted_mae_loss_pixel(
    predicted,
    target,
    mask,
    balancing_weights=DEFAULT_BALANCING_WEIGHTS,
    threshold=0,        # unused in forward (matches the PyTorch module)
    boundary_bbox=None,
):
    """JAX/Pallas equivalent of WeightedMaeLossPixel.forward.

    predicted / target / mask: arrays of identical shape (e.g. NCHW).
    Returns an array of the same (possibly boundary-cropped) shape, in
    predicted's dtype.
    """
    if boundary_bbox is not None:
        # TODO(synk): fold the boundary crop into the BlockSpec index_map
        # (DMA address offsets + masked edge lanes) instead of materializing
        # three cropped copies here.
        xl, xr, yl, yr = boundary_bbox
        Nx, Ny = predicted.shape[-2], predicted.shape[-1]
        predicted = predicted[..., xl:Nx - xr, yl:Ny - yr]
        target = target[..., xl:Nx - xr, yl:Ny - yr]
        mask = mask[..., xl:Nx - xr, yl:Ny - yr]

    out_dtype = predicted.dtype

    # Keep the mask NARROW through HBM (the kernel upcasts in-register).
    # bool -> int8 only to sidestep i1 vector-layout concerns; int8/uint8/
    # bf16/f32 masks pass through untouched.
    if mask.dtype == jnp.bool_:
        mask = mask.astype(jnp.int8)

    orig_shape = predicted.shape
    n = math.prod(orig_shape) if orig_shape else 1

    # Pad only to a multiple of 128 lanes (the (8,128) constraint is on the
    # BlockSpec; partial last row-blocks are handled by Pallas).
    n_pad = (-n) % _LANES
    total = n + n_pad
    rows = total // _LANES

    def _prep(x):
        x = jnp.ravel(x)
        if n_pad:
            # TODO(synk): handle the <128-element tail in-kernel (masked store
            # on the final block via scalar-prefetched count) to remove these
            # pad/slice copies entirely on ragged shapes.
            x = jnp.pad(x, (0, n_pad))   # mask pads with 0 -> padded outputs are 0
        return x.reshape(rows, _LANES)

    pred2d = _prep(predicted)
    targ2d = _prep(target)
    mask2d = _prep(mask)

    out2d = _run_elementwise(pred2d, targ2d, mask2d, balancing_weights, out_dtype)
    out = out2d.reshape(-1)
    if n_pad:
        out = out[:n]
    return out.reshape(orig_shape)


class WeightedMaeLossPixel:
    """Thin stateless wrapper mirroring the PyTorch module interface."""

    def __init__(self, weights, threshold=0, boundary_bbox=None):
        self.balancing_weights = tuple(float(w) for w in weights)
        self.threshold = threshold
        self._bbox = boundary_bbox
        if self._bbox is not None:
            print(f"[{self.__class__.__name__}] Bbox:{self._bbox}")

    def __call__(self, predicted, target, mask):
        return weighted_mae_loss_pixel(
            predicted,
            target,
            mask,
            balancing_weights=self.balancing_weights,
            threshold=self.threshold,
            boundary_bbox=self._bbox,
        )


def _reference(predicted, target, mask, bw, out_dtype):
    """Pure-JAX reference (f32 compute, downcast at the end)."""
    p = predicted.astype(jnp.float32)
    t = target.astype(jnp.float32)
    m = mask.astype(jnp.float32)
    w = jnp.full_like(m, bw[0])
    for i in range(1, len(bw)):
        w = w + (bw[i] - bw[i - 1]) * (t >= bw[i]).astype(jnp.float32)
    w = w * m
    return (w * jnp.abs(p - t)).astype(out_dtype)


if __name__ == "__main__":
    key = jax.random.PRNGKey(0)
    k1, k2, k3 = jax.random.split(key, 3)

    loss_fn = WeightedMaeLossPixel(DEFAULT_BALANCING_WEIGHTS)

    # Case 1: f32, NCHW, size divisible by 128 (zero-pad path), f32 mask.
    B, C, H, W = 2, 4, 16, 16
    predicted = jax.random.uniform(k1, (B, C, H, W), jnp.float32) * 40.0
    target = jax.random.uniform(k2, (B, C, H, W), jnp.float32) * 40.0
    mask_f32 = (jax.random.uniform(k3, (B, C, H, W), jnp.float32) > 0.3).astype(jnp.float32)

    out = jax.block_until_ready(loss_fn(predicted, target, mask_f32))
    ref = _reference(predicted, target, mask_f32, DEFAULT_BALANCING_WEIGHTS, jnp.float32)
    assert out.shape == (B, C, H, W)
    assert out.dtype == jnp.float32
    assert jnp.allclose(out, ref, atol=1e-5, rtol=1e-5), "f32 mismatch vs reference"

    # Case 2: narrow (bool) mask through HBM — exercises the int8 mask stream.
    B2, C2, H2, W2 = 2, 4, 32, 16
    p2 = jax.random.uniform(k2, (B2, C2, H2, W2), jnp.float32) * 40.0
    t2 = jax.random.uniform(k3, (B2, C2, H2, W2), jnp.float32) * 40.0
    m2_bool = jax.random.uniform(k1, (B2, C2, H2, W2), jnp.float32) > 0.3
    out2 = jax.block_until_ready(loss_fn(p2, t2, m2_bool))
    ref2 = _reference(p2, t2, m2_bool, DEFAULT_BALANCING_WEIGHTS, jnp.float32)
    assert out2.shape == (B2, C2, H2, W2)
    assert jnp.allclose(out2, ref2, atol=1e-5, rtol=1e-5), "bool-mask mismatch vs reference"

    # Case 3: ragged size (exercises the <128-element tail pad + partial blocks).
    B3, C3, H3, W3 = 2, 3, 15, 17
    p3 = jax.random.uniform(k2, (B3, C3, H3, W3), jnp.float32) * 40.0
    t3 = jax.random.uniform(k3, (B3, C3, H3, W3), jnp.float32) * 40.0
    m3 = (jax.random.uniform(k1, (B3, C3, H3, W3), jnp.float32) > 0.3).astype(jnp.float32)
    out3 = jax.block_until_ready(loss_fn(p3, t3, m3))
    ref3 = _reference(p3, t3, m3, DEFAULT_BALANCING_WEIGHTS, jnp.float32)
    assert out3.shape == (B3, C3, H3, W3)
    assert jnp.allclose(out3, ref3, atol=1e-5, rtol=1e-5), "ragged mismatch vs reference"

    # Case 4: bf16 end-to-end (native dtype through HBM, f32 compute in-kernel).
    pb = predicted.astype(jnp.bfloat16)
    tb = target.astype(jnp.bfloat16)
    mb = mask_f32.astype(jnp.bfloat16)
    out4 = jax.block_until_ready(loss_fn(pb, tb, mb))
    ref4 = _reference(pb, tb, mb, DEFAULT_BALANCING_WEIGHTS, jnp.bfloat16)
    assert out4.dtype == jnp.bfloat16
    assert jnp.allclose(out4.astype(jnp.float32), ref4.astype(jnp.float32),
                        atol=1e-2, rtol=1e-2), "bf16 mismatch vs reference"

    print("KERNEL_OK")
</pallas_src>

<mosaic_0001>
module attributes {stable_mosaic.version = 11 : i64} {
  func.func @_weighted_mae_kernel(%arg0: i32, %arg1: memref<16x128xf32, #tpu.memory_space<vmem>>, %arg2: memref<16x128xf32, #tpu.memory_space<vmem>>, %arg3: memref<16x128xf32, #tpu.memory_space<vmem>>, %arg4: memref<16x128xf32, #tpu.memory_space<vmem>>) attributes {dimension_semantics = [#tpu.dimension_semantics<parallel>], iteration_bounds = array<i64: 1>, scalar_prefetch = 0 : i64, scratch_operands = 0 : i64, tpu.core_type = #tpu.core_type<tc>, window_params = [{transform_indices = @transform_0, window_bounds = array<i64: 16, 128>}, {transform_indices = @transform_1, window_bounds = array<i64: 16, 128>}, {transform_indices = @transform_2, window_bounds = array<i64: 16, 128>}, {transform_indices = @transform_3, window_bounds = array<i64: 16, 128>}]} {
    %c0 = arith.constant 0 : index
    %c0_0 = arith.constant 0 : index
    %0 = vector.load %arg1[%c0, %c0_0] : memref<16x128xf32, #tpu.memory_space<vmem>>, vector<16x128xf32>
    %c0_1 = arith.constant 0 : index
    %c0_2 = arith.constant 0 : index
    %1 = vector.load %arg2[%c0_1, %c0_2] : memref<16x128xf32, #tpu.memory_space<vmem>>, vector<16x128xf32>
    %c0_3 = arith.constant 0 : index
    %c0_4 = arith.constant 0 : index
    %2 = vector.load %arg3[%c0_3, %c0_4] : memref<16x128xf32, #tpu.memory_space<vmem>>, vector<16x128xf32>
    %cst = arith.constant 1.000000e+00 : f32
    %3 = vector.broadcast %cst : f32 to vector<16x128xf32>
    %cst_5 = arith.constant 2.000000e+00 : f32
    %4 = vector.broadcast %cst_5 : f32 to vector<16x128xf32>
    %5 = arith.cmpf oge, %1, %4 : vector<16x128xf32>
    %cst_6 = arith.constant 1.000000e+00 : f32
    %cst_7 = arith.constant 0.000000e+00 : f32
    %6 = vector.broadcast %cst_6 : f32 to vector<16x128xf32>
    %7 = vector.broadcast %cst_7 : f32 to vector<16x128xf32>
    %8 = arith.select %5, %6, %7 : vector<16x128xi1>, vector<16x128xf32>
    %9 = arith.addf %3, %8 : vector<16x128xf32>
    %cst_8 = arith.constant 5.000000e+00 : f32
    %10 = vector.broadcast %cst_8 : f32 to vector<16x128xf32>
    %11 = arith.cmpf oge, %1, %10 : vector<16x128xf32>
    %cst_9 = arith.constant 3.000000e+00 : f32
    %cst_10 = arith.constant 0.000000e+00 : f32
    %12 = vector.broadcast %cst_9 : f32 to vector<16x128xf32>
    %13 = vector.broadcast %cst_10 : f32 to vector<16x128xf32>
    %14 = arith.select %11, %12, %13 : vector<16x128xi1>, vector<16x128xf32>
    %15 = arith.addf %9, %14 : vector<16x128xf32>
    %cst_11 = arith.constant 1.000000e+01 : f32
    %16 = vector.broadcast %cst_11 : f32 to vector<16x128xf32>
    %17 = arith.cmpf oge, %1, %16 : vector<16x128xf32>
    %cst_12 = arith.constant 5.000000e+00 : f32
    %cst_13 = arith.constant 0.000000e+00 : f32
    %18 = vector.broadcast %cst_12 : f32 to vector<16x128xf32>
    %19 = vector.broadcast %cst_13 : f32 to vector<16x128xf32>
    %20 = arith.select %17, %18, %19 : vector<16x128xi1>, vector<16x128xf32>
    %21 = arith.addf %15, %20 : vector<16x128xf32>
    %cst_14 = arith.constant 3.000000e+01 : f32
    %22 = vector.broadcast %cst_14 : f32 to vector<16x128xf32>
    %23 = arith.cmpf oge, %1, %22 : vector<16x128xf32>
    %cst_15 = arith.constant 2.000000e+01 : f32
    %cst_16 = arith.constant 0.000000e+00 : f32
    %24 = vector.broadcast %cst_15 : f32 to vector<16x128xf32>
    %25 = vector.broadcast %cst_16 : f32 to vector<16x128xf32>
    %26 = arith.select %23, %24, %25 : vector<16x128xi1>, vector<16x128xf32>
    %27 = arith.addf %21, %26 : vector<16x128xf32>
    %28 = arith.mulf %27, %2 : vector<16x128xf32>
    %29 = arith.subf %0, %1 : vector<16x128xf32>
    %30 = math.absf %29 : vector<16x128xf32>
    %31 = arith.mulf %28, %30 : vector<16x128xf32>
    %c0_17 = arith.constant 0 : index
    %c0_18 = arith.constant 0 : index
    %32 = vector.load %arg4[%c0_17, %c0_18] : memref<16x128xf32, #tpu.memory_space<vmem>>, vector<16x128xf32>
    tpu.vector_store %arg4[%c0_17, %c0_18], %31 {strides = array<i32>} : memref<16x128xf32, #tpu.memory_space<vmem>>, vector<16x128xf32>,
    return
  }
  func.func @transform_0(%arg0: i32) -> (i32, i32) {
    %c0_i32 = arith.constant 0 : i32
    %c0_i32_0 = arith.constant 0 : i32
    return %arg0, %c0_i32 : i32, i32
  }
  func.func @transform_1(%arg0: i32) -> (i32, i32) {
    %c0_i32 = arith.constant 0 : i32
    %c0_i32_0 = arith.constant 0 : i32
    return %arg0, %c0_i32 : i32, i32
  }
  func.func @transform_2(%arg0: i32) -> (i32, i32) {
    %c0_i32 = arith.constant 0 : i32
    %c0_i32_0 = arith.constant 0 : i32
    return %arg0, %c0_i32 : i32, i32
  }
  func.func @transform_3(%arg0: i32) -> (i32, i32) {
    %c0_i32 = arith.constant 0 : i32
    %c0_i32_0 = arith.constant 0 : i32
    return %arg0, %c0_i32 : i32, i32
  }
}

</mosaic_0001>

<bundles_post_ra>
// kernel: tpu_custom_call.1
= control target key start
LH: loop header
LB: loop body
LE: loop exit
PB: predicated region body
PF: predicated region fallthrough
CT: control target
= control target key end

     0   :  { %8 = vsyncpa [#allocation3], 0  ;;  %s309_s0 = inlined_call_operand.hbm [shape: f32[16,128], index: 0, kind: input, shape index: {}]   ;;  %s310_s1 = inlined_call_operand.hbm [shape: f32[16,128], index: 1, kind: input, shape index: {}]   ;;  %s311_s2 = inlined_call_operand.hbm [shape: f32[16,128], index: 2, kind: input, shape index: {}]   ;;  %s312_s3 = inlined_call_operand.hbm [shape: f32[16,128], index: 3, kind: output, shape index: {}]  }
   0x1   :  { %9 = vsyncpa [#allocation6], 0 }
   0x2   :  { %10 = vsyncpa [#allocation4], 0  ;;  %s215_s12 = smov [#allocation5]   ;;  %s216_s14 = smov [#allocation2]  }
   0x3   :  { %s28_s13 = sshll.u32 %s215_s12, 4  ;;  %s16_s15 = sshll.u32 %s216_s14, 4  ;;  %s29_s13 = int_to_ptr.vmem [resolvable:$true] %s28_s13  ;;  %s242_s15 = int_to_ptr.vmem [resolvable:$true] %s16_s15 }
   0x4   :  { %s121_s18 = scalar_lea.hbm %s310_s1, 256 }
   0x5   :  { %p122_p0 = scmp.ne.s32.totalorder %s310_s1, %s121_s18  ;;  %p125_p1 = scmp.lt.u32.totalorder %s121_s18, %s310_s1 }
   0x7   :  { %p127_p2 = pnand %p125_p1, %p122_p0 }
   0x9   :  { %130 = shalt.err (!%p127_p2)
}
   0xa   :  { %s131_s23 = scalar_lea.vmem %s29_s13, 256  ;;  %p136_p4 = scmp.lt.s32.totalorder %s29_s13, %s29_s13 }
   0xb   :  { %p132_p3 = scmp.ne.s32.totalorder %s29_s13, %s131_s23  ;;  %p137_p5 = scmp.lt.s32.totalorder %s131_s23, %s131_s23 }
   0xd   :  { %p138_p6 = por %p137_p5, %p136_p4 }
   0xf   :  { %p139_p7 = pnand %p138_p6, %p132_p3 }
  0x11   :  { %142 = shalt.err (!%p139_p7)
}
  0x12   :  { %s217_s24 = smov 128   ;;  %s218_s25 = smov 8  }
  0x13   :  { %34 = dma.hbm_to_vmem [thread:$0]  %s310_s1, 256, %s29_s13, [#allocation6], %s217_s24, %s217_s24, %s218_s25  }
  0x14   :  { %s143_s30 = scalar_lea.hbm %s309_s0, 256 }
  0x15   :  { %p144_p8 = scmp.ne.s32.totalorder %s309_s0, %s143_s30  ;;  %p147_p9 = scmp.lt.u32.totalorder %s143_s30, %s309_s0 }
  0x17   :  { %p149_p10 = pnand %p147_p9, %p144_p8 }
  0x19   :  { %152 = shalt.err (!%p149_p10)
}
  0x1a   :  { %s153_s8 = scalar_lea.vmem %s242_s15, 256  ;;  %p158_p12 = scmp.lt.s32.totalorder %s242_s15, %s242_s15 }
  0x1b   :  { %p154_p11 = scmp.ne.s32.totalorder %s242_s15, %s153_s8  ;;  %p159_p13 = scmp.lt.s32.totalorder %s153_s8, %s153_s8 }
  0x1d   :  { %p160_p0 = por %p159_p13, %p158_p12 }
  0x1f   :  { %p161_p1 = pnand %p160_p0, %p154_p11 }
  0x21   :  { %164 = shalt.err (!%p161_p1)
}
  0x22   :  { %22 = dma.hbm_to_vmem [thread:$0]  %s309_s0, 256, %s242_s15, [#allocation3], %s217_s24, %s217_s24, %s218_s25  }
  0x23   :  { %s219_s10 = smov [#allocation7]   ;;  %s165_s14 = scalar_lea.hbm %s311_s2, 256 }
  0x24   :  { %s40_s11 = sshll.u32 %s219_s10, 4  ;;  %p166_p2 = scmp.ne.s32.totalorder %s311_s2, %s165_s14  ;;  %s41_s11 = int_to_ptr.vmem [resolvable:$true] %s40_s11 }
  0x25   :  { %p169_p3 = scmp.lt.u32.totalorder %s165_s14, %s311_s2 }
  0x27   :  { %p171_p4 = pnand %p169_p3, %p166_p2 }
  0x29   :  { %174 = shalt.err (!%p171_p4)
}
  0x2a   :  { %s175_s20 = scalar_lea.vmem %s41_s11, 256  ;;  %p180_p6 = scmp.lt.s32.totalorder %s41_s11, %s41_s11 }
  0x2b   :  { %p176_p5 = scmp.ne.s32.totalorder %s41_s11, %s175_s20  ;;  %p181_p7 = scmp.lt.s32.totalorder %s175_s20, %s175_s20 }
  0x2d   :  { %p182_p8 = por %p181_p7, %p180_p6 }
  0x2f   :  { %p183_p9 = pnand %p182_p8, %p176_p5 }
  0x31   :  { %186 = shalt.err (!%p183_p9)
}
  0x32   :  { %46 = dma.hbm_to_vmem [thread:$0]  %s311_s2, 256, %s41_s11, [#allocation6], %s217_s24, %s217_s24, %s218_s25  }
  0x33   :  { %209 = dma.done.wait [#allocation3], 256  }
  0x34   :  { %210 = vsyncadd [#allocation3], 4294967040 }
  0x35   :  { %211 = dma.done.wait [#allocation6], 512  }
  0x36   :  { %212 = vsyncadd [#allocation6], 4294966784  ;;  %v58_v0 = vld [vmem:[#allocation5] sm:$0xff]  ;;  %v59_v1 = vld [vmem:[#allocation5 + $0x8] sm:$0xff]  ;;  %v220_v3 = vmov 0.0   ;;  %s221_s2 = smov [#allocation8]  }
  0x37   :  { %vm62_vm0 = vcmp.ge.f32.partialorder %v58_v0, 2.0  ;;  %vm68_vm1 = vcmp.ge.f32.partialorder %v58_v0, 5.0  ;;  %vm74_vm2 = vcmp.ge.f32.partialorder %v58_v0, 10.0  ;;  %v56_v2 = vld [vmem:[#allocation2] sm:$0xff]  ;;  %vm80_vm3 = vcmp.ge.f32.partialorder %v58_v0, 30.0  ;;  %v57_v8 = vld [vmem:[#allocation2 + $0x8] sm:$0xff] }
  0x38   :  { %v64_v4 = vsel %vm62_vm0, 1.0, %v220_v3  ;;  %v70_v5 = vsel %vm68_vm1, 3.0, %v220_v3  ;;  %vm63_vm4 = vcmp.ge.f32.partialorder %v59_v1, 2.0  ;;  %vm69_vm5 = vcmp.ge.f32.partialorder %v59_v1, 5.0  ;;  %v60_v19 = vld [vmem:[#allocation7] sm:$0xff]  ;;  %v61_v24 = vld [vmem:[#allocation7 + $0x8] sm:$0xff] }
  0x39   :  { %v66_v6 = vadd.f32 1.0, %v64_v4  ;;  %v76_v7 = vsel %vm74_vm2, 5.0, %v220_v3  ;;  %v65_v9 = vsel %vm63_vm4, 1.0, %v220_v3  ;;  %v71_v10 = vsel %vm69_vm5, 3.0, %v220_v3  ;;  %s101_s21 = sshll.u32 %s221_s2, 4  ;;  %s102_s21 = int_to_ptr.vmem [resolvable:$true] %s101_s21 }
  0x3a   :  { %vm75_vm6 = vcmp.ge.f32.partialorder %v59_v1, 10.0  ;;  %v88_v12 = vsub.f32 %v56_v2, %v58_v0  ;;  %v67_v13 = vadd.f32 1.0, %v65_v9  ;;  %vm81_vm7 = vcmp.ge.f32.partialorder %v59_v1, 30.0  ;;  %s187_s22 = scalar_lea.vmem %s102_s21, 256  ;;  %p192_p11 = scmp.lt.s32.totalorder %s102_s21, %s102_s21 }
  0x3b   :  { %v72_v11 = vadd.f32 %v70_v5, %v66_v6  ;;  %v82_v14 = vsel %vm80_vm3, 20.0, %v220_v3  ;;  %v77_v15 = vsel %vm75_vm6, 5.0, %v220_v3  ;;  %v89_v18 = vsub.f32 %v57_v8, %v59_v1  ;;  %p188_p10 = scmp.ne.s32.totalorder %s102_s21, %s187_s22  ;;  %p193_p12 = scmp.lt.s32.totalorder %s187_s22, %s187_s22 }
  0x3c   :  { %v73_v17 = vadd.f32 %v71_v10, %v67_v13  ;;  %v83_v20 = vsel %vm81_vm7, 20.0, %v220_v3  ;;  %v90_v22 = vand.u32 2147483647, %v88_v12 }
  0x3d   :  { %v78_v16 = vadd.f32 %v76_v7, %v72_v11  ;;  %v91_v27 = vand.u32 2147483647, %v89_v18  ;;  %p194_p13 = por %p193_p12, %p192_p11 }
  0x3e   :  { %v79_v23 = vadd.f32 %v77_v15, %v73_v17 }
  0x3f   :  { %v84_v21 = vadd.f32 %v82_v14, %v78_v16  ;;  %p195_p0 = pnand %p194_p13, %p188_p10 }
  0x40   :  { %v85_v26 = vadd.f32 %v83_v20, %v79_v23 }
  0x41   :  { %v86_v25 = vmul.f32 %v84_v21, %v60_v19 }
  0x42   :  { %v87_v29 = vmul.f32 %v85_v26, %v61_v24 }
  0x43   :  { %v92_v28 = vmul.f32 %v90_v22, %v86_v25 }
  0x44   :  { %v93_v30 = vmul.f32 %v91_v27, %v87_v29 }
  0x45   :  { %94 = vst [vmem:[#allocation8] sm:$0xff] %v92_v28 }
  0x46   :  { %95 = vst [vmem:[#allocation8 + $0x8] sm:$0xff] %v93_v30 }
  0x47   :  { %198 = shalt.err (!%p195_p0)
}
  0x48   :  { %s199_s27 = scalar_lea.hbm %s312_s3, 256 }
  0x49   :  { %p200_p1 = scmp.ne.s32.totalorder %s312_s3, %s199_s27  ;;  %p203_p2 = scmp.lt.u32.totalorder %s199_s27, %s312_s3 }
  0x4b   :  { %p205_p3 = pnand %p203_p2, %p200_p1 }
  0x4d   :  { %208 = shalt.err (!%p205_p3)
}
  0x4e   :  { %107 = dma.vmem_to_hbm [thread:$0]  %s102_s21, 256, %s312_s3, [#allocation4], %s217_s24, %s217_s24, %s218_s25  }
  0x4f   :  { %213 = dma.done.wait [#allocation4], 256  }
  0x50   :  { %214 = vsyncadd [#allocation4], 4294967040 }
  0x51   :  { %111 = vsyncpa [#allocation3], 1 }
  0x52   :  { %112 = vsyncpa [#allocation6], 1 }
  0x53   :  { %113 = vsyncpa [#allocation4], 1 }

</bundles_post_ra>
